<compile_context>
chip_gen: v5e
topology: v5e:2x2
jax: 0.10.0
libtpu: 0.0.40
codegen_flags: <defaults>
</compile_context>

<pallas_src>
import jax
import jax.numpy as jnp
from jax.experimental import pallas as pl
from jax.experimental.pallas import tpu as pltpu


def _ce2d_kernel(x_ref, t_ref, o_ref, acc_ref):
    # x_ref:   (1, C, Pt)   logits tile (channels on sublanes, pixels on lanes)
    # t_ref:   (1, 1, Pt)   integer targets (-1 = ignore / lane padding)
    # o_ref:   (1, 1, 1, 1) per-(group, batch) partial loss sum (f32)
    # acc_ref: (1, 1, Pt)   f32 lane-wise running sums across pixel tiles
    p_idx = pl.program_id(2)

    @pl.when(p_idx == 0)
    def _():
        acc_ref[...] = jnp.zeros_like(acc_ref)

    x = x_ref[...].astype(jnp.float32)                       # (1, C, Pt)
    t = t_ref[...].astype(jnp.int32)                         # (1, 1, Pt)

    # Numerically-stable log-sum-exp over the channel (sublane) axis.
    m = jnp.max(x, axis=1, keepdims=True)                    # (1, 1, Pt)
    lse = jnp.log(jnp.sum(jnp.exp(x - m), axis=1, keepdims=True)) + m

    # Gather x[target] via a one-hot compare along C (no logp materialized).
    cls = jax.lax.broadcasted_iota(jnp.int32, x.shape, dimension=1)
    gathered = jnp.sum(jnp.where(cls == t, x, 0.0), axis=1, keepdims=True)

    # ignore_index=-1 (and padded lanes) -> exactly 0 loss for that pixel.
    per_pix = jnp.where(t >= 0, lse - gathered, 0.0)         # (1, 1, Pt)

    # Lane-wise VPU accumulate only; full XLU reduce deferred to the last tile.
    acc_ref[...] += per_pix

    @pl.when(p_idx == pl.num_programs(2) - 1)
    def _():
        o_ref[...] = jnp.sum(acc_ref[...]).reshape(1, 1, 1, 1)


def _round_up(v, m):
    return ((v + m - 1) // m) * m


def cross_entropy_loss_2d(inputs, targets, *,
                          working_set_budget_bytes=20 << 20,
                          vmem_limit_bytes=48 << 20):
    """inputs: (N, C, H, W) float, targets: (N, H, W) int (-1 = ignore).
    Returns: (N,) float32, identical to the PyTorch module's forward."""
    N, C, H, W = inputs.shape
    P = H * W

    # ---- pixel-tile size from an explicit per-lane VMEM byte budget --------
    x_item = jnp.dtype(inputs.dtype).itemsize
    sub_mult = 8 * max(1, 4 // x_item)        # sublane packing: 8/16/32 rows
    c_pad = _round_up(C, sub_mult)            # account for sublane padding
    x_lane = c_pad * x_item                   # logits bytes per lane / buffer
    t_lane = 8 * 4                            # (1,1,Pt) int block pads to 8 rows
    temps_lane = 2 * c_pad * 4                # in-kernel f32 upcast + exp temps
    acc_lane = 8 * 4                          # (1,1,Pt) f32 accumulator
    per_lane = 2 * (x_lane + t_lane) + temps_lane + acc_lane
    p_budget = max(128, (working_set_budget_bytes // per_lane) // 128 * 128)

    p_ceil = _round_up(P, 128)
    # Prefer >= 2 pixel tiles so the leading "group" axis can feed both v7x
    # TensorCores even when N == 1 (harmless on single-TC v5e / v6e).
    p_cap = _round_up(-(-P // 2), 128) if p_ceil >= 256 else p_ceil
    p_tile = max(128, min(p_budget, p_cap))

    total_tiles = -(-P // p_tile)
    G = 2 if total_tiles >= 2 else 1
    tiles_per_group = -(-total_tiles // G)
    P_pad = G * tiles_per_group * p_tile

    # ---- free reshapes (no NCHW transpose); pad pixel axis only if needed --
    x = inputs.reshape(N, C, P)
    if jnp.issubdtype(targets.dtype, jnp.integer):
        t = targets.reshape(N, 1, P)          # keep int8/int16 if caller has it
    else:
        t = targets.astype(jnp.int32).reshape(N, 1, P)
    if P_pad != P:
        x = jnp.pad(x, ((0, 0), (0, 0), (0, P_pad - P)))
        t = jnp.pad(t, ((0, 0), (0, 0), (0, P_pad - P)), constant_values=-1)

    tpg = tiles_per_group
    x_index = lambda g, n, p, tpg=tpg: (n, 0, g * tpg + p)
    t_index = lambda g, n, p, tpg=tpg: (n, 0, g * tpg + p)
    o_index = lambda g, n, p: (g, n, 0, 0)

    x_spec_kwargs = {}
    # Large-C configs force small pixel tiles; a third buffer hides DMA latency.
    if p_tile <= 1024 and total_tiles >= 8:
        x_spec_kwargs["pipeline_mode"] = pl.Buffered(3)

    out = pl.pallas_call(
        _ce2d_kernel,
        out_shape=jax.ShapeDtypeStruct((G, N, 1, 1), jnp.float32),
        grid_spec=pltpu.PrefetchScalarGridSpec(
            num_scalar_prefetch=0,
            grid=(G, N, tiles_per_group),
            in_specs=[
                pl.BlockSpec((1, C, p_tile), x_index, **x_spec_kwargs),
                pl.BlockSpec((1, 1, p_tile), t_index),
            ],
            out_specs=pl.BlockSpec((1, 1, 1, 1), o_index),
            scratch_shapes=[pltpu.VMEM((1, 1, p_tile), jnp.float32)],
        ),
        compiler_params=pltpu.CompilerParams(
            dimension_semantics=("parallel", "parallel", "arbitrary"),
            vmem_limit_bytes=vmem_limit_bytes),
    )(x, t)

    # Cross-group partial-sum reduction + scale:
    # loss.mean(dim=2).mean(dim=1) == sum over all H*W pixels / (H*W).
    return out[:, :, 0, 0].sum(axis=0) * (1.0 / float(P))


def _reference(inputs, targets):
    # Pure-JAX reference matching PyTorch semantics
    # (NLLLoss(reduction='none', ignore_index=-1) then .mean(2).mean(1)).
    logp = jax.nn.log_softmax(inputs.astype(jnp.float32), axis=1)  # (N,C,H,W)
    valid = targets != -1
    t_safe = jnp.where(valid, targets, 0)
    gathered = jnp.take_along_axis(logp, t_safe[:, None, :, :], axis=1)[:, 0]
    loss = jnp.where(valid, -gathered, 0.0)                         # (N,H,W)
    return loss.mean(axis=2).mean(axis=1)                           # (N,)


def _check(key, N, C, H, W):
    k1, k2, k3 = jax.random.split(key, 3)
    inputs = jax.random.normal(k1, (N, C, H, W), dtype=jnp.float32)
    targets = jax.random.randint(k2, (N, H, W), 0, C, dtype=jnp.int32)
    ignore_mask = jax.random.bernoulli(k3, 0.1, (N, H, W))
    targets = jnp.where(ignore_mask, -1, targets)

    out = cross_entropy_loss_2d(inputs, targets)
    out = jax.block_until_ready(out)

    ref = _reference(inputs, targets)
    assert out.shape == (N,)
    assert jnp.allclose(out, ref, atol=1e-5, rtol=1e-5), (out, ref)


if __name__ == "__main__":
    key = jax.random.PRNGKey(0)
    k_a, k_b = jax.random.split(key, 2)

    # Main case: exercises the 2-group (megacore-friendly) path, no padding.
    _check(k_a, N=2, C=4, H=16, W=16)
    # Awkward case: P not a multiple of 128 -> pixel-axis padding path, G=1.
    _check(k_b, N=1, C=5, H=7, W=9)

    print("KERNEL_OK")
</pallas_src>

<mosaic_0001>
module attributes {stable_mosaic.version = 11 : i64} {
  func.func @_ce2d_kernel(%arg0: i32, %arg1: i32, %arg2: i32, %arg3: memref<1x4x128xf32, #tpu.memory_space<vmem>>, %arg4: memref<1x1x128xi32, #tpu.memory_space<vmem>>, %arg5: memref<1x1x1x1xf32, #tpu.memory_space<vmem>>, %arg6: memref<1x1x128xf32, #tpu.memory_space<vmem>>) attributes {dimension_semantics = [#tpu.dimension_semantics<parallel>, #tpu.dimension_semantics<parallel>, #tpu.dimension_semantics<arbitrary>], iteration_bounds = array<i64: 2, 2, 1>, scalar_prefetch = 0 : i64, scratch_operands = 1 : i64, tpu.core_type = #tpu.core_type<tc>, window_params = [{transform_indices = @transform_0, window_bounds = array<i64: 1, 4, 128>}, {transform_indices = @transform_1, window_bounds = array<i64: 1, 1, 128>}, {transform_indices = @transform_2, window_bounds = array<i64: 1, 1, 1, 1>}]} {
    %c0_i32 = arith.constant 0 : i32
    %0 = arith.cmpi eq, %arg2, %c0_i32 : i32
    %1 = arith.extui %0 : i1 to i32
    %c0_i32_0 = arith.constant 0 : i32
    %2 = arith.cmpi ne, %1, %c0_i32_0 : i32
    scf.if %2 {
      %cst_19 = arith.constant 0.000000e+00 : f32
      %32 = vector.broadcast %cst_19 : f32 to vector<1x1x128xf32>
      %c0_20 = arith.constant 0 : index
      %c0_21 = arith.constant 0 : index
      %c0_22 = arith.constant 0 : index
      %33 = vector.load %arg6[%c0_20, %c0_21, %c0_22] : memref<1x1x128xf32, #tpu.memory_space<vmem>>, vector<1x1x128xf32>
      tpu.vector_store %arg6[%c0_20, %c0_21, %c0_22], %32 {strides = array<i32>} : memref<1x1x128xf32, #tpu.memory_space<vmem>>, vector<1x1x128xf32>,
    } else {
    }
    %c0 = arith.constant 0 : index
    %c0_1 = arith.constant 0 : index
    %c0_2 = arith.constant 0 : index
    %3 = vector.load %arg3[%c0, %c0_1, %c0_2] : memref<1x4x128xf32, #tpu.memory_space<vmem>>, vector<1x4x128xf32>
    %c0_3 = arith.constant 0 : index
    %c0_4 = arith.constant 0 : index
    %c0_5 = arith.constant 0 : index
    %4 = vector.load %arg4[%c0_3, %c0_4, %c0_5] : memref<1x1x128xi32, #tpu.memory_space<vmem>>, vector<1x1x128xi32>
    %cst = arith.constant dense<0xFF800000> : vector<1x128xf32>
    %5 = vector.multi_reduction <maximumf>, %3, %cst [1] : vector<1x4x128xf32> to vector<1x128xf32>
    %6 = vector.shape_cast %5 : vector<1x128xf32> to vector<1x1x128xf32>
    %7 = vector.broadcast %6 : vector<1x1x128xf32> to vector<1x4x128xf32>
    %8 = arith.subf %3, %7 : vector<1x4x128xf32>
    %9 = math.exp %8 : vector<1x4x128xf32>
    %cst_6 = arith.constant dense<0.000000e+00> : vector<1x128xf32>
    %10 = vector.multi_reduction <add>, %9, %cst_6 [1] : vector<1x4x128xf32> to vector<1x128xf32>
    %11 = vector.shape_cast %10 : vector<1x128xf32> to vector<1x1x128xf32>
    %12 = math.log %11 : vector<1x1x128xf32>
    %13 = arith.addf %12, %6 : vector<1x1x128xf32>
    %14 = tpu.iota {dimensions = array<i32: 1>} : vector<1x4x128xi32>
    %15 = vector.broadcast %4 : vector<1x1x128xi32> to vector<1x4x128xi32>
    %16 = arith.cmpi eq, %14, %15 : vector<1x4x128xi32>
    %cst_7 = arith.constant 0.000000e+00 : f32
    %17 = vector.broadcast %cst_7 : f32 to vector<1x4x128xf32>
    %18 = arith.select %16, %3, %17 : vector<1x4x128xi1>, vector<1x4x128xf32>
    %cst_8 = arith.constant dense<0.000000e+00> : vector<1x128xf32>
    %19 = vector.multi_reduction <add>, %18, %cst_8 [1] : vector<1x4x128xf32> to vector<1x128xf32>
    %20 = vector.shape_cast %19 : vector<1x128xf32> to vector<1x1x128xf32>
    %c0_i32_9 = arith.constant 0 : i32
    %21 = vector.broadcast %c0_i32_9 : i32 to vector<1x1x128xi32>
    %22 = arith.cmpi sge, %4, %21 : vector<1x1x128xi32>
    %23 = arith.subf %13, %20 : vector<1x1x128xf32>
    %cst_10 = arith.constant 0.000000e+00 : f32
    %24 = vector.broadcast %cst_10 : f32 to vector<1x1x128xf32>
    %25 = arith.select %22, %23, %24 : vector<1x1x128xi1>, vector<1x1x128xf32>
    %c0_11 = arith.constant 0 : index
    %c0_12 = arith.constant 0 : index
    %c0_13 = arith.constant 0 : index
    %26 = vector.load %arg6[%c0_11, %c0_12, %c0_13] : memref<1x1x128xf32, #tpu.memory_space<vmem>>, vector<1x1x128xf32>
    %27 = arith.addf %26, %25 : vector<1x1x128xf32>
    %c0_14 = arith.constant 0 : index
    %c0_15 = arith.constant 0 : index
    %c0_16 = arith.constant 0 : index
    %28 = vector.load %arg6[%c0_14, %c0_15, %c0_16] : memref<1x1x128xf32, #tpu.memory_space<vmem>>, vector<1x1x128xf32>
    tpu.vector_store %arg6[%c0_14, %c0_15, %c0_16], %27 {strides = array<i32>} : memref<1x1x128xf32, #tpu.memory_space<vmem>>, vector<1x1x128xf32>,
    %c0_i32_17 = arith.constant 0 : i32
    %29 = arith.cmpi eq, %arg2, %c0_i32_17 : i32
    %30 = arith.extui %29 : i1 to i32
    %c0_i32_18 = arith.constant 0 : i32
    %31 = arith.cmpi ne, %30, %c0_i32_18 : i32
    scf.if %31 {
      %c0_19 = arith.constant 0 : index
      %c0_20 = arith.constant 0 : index
      %c0_21 = arith.constant 0 : index
      %32 = vector.load %arg6[%c0_19, %c0_20, %c0_21] : memref<1x1x128xf32, #tpu.memory_space<vmem>>, vector<1x1x128xf32>
      %33 = vector.shape_cast %32 : vector<1x1x128xf32> to vector<1x1x1x128xf32>
      %cst_22 = arith.constant dense<0.000000e+00> : vector<1xf32>
      %34 = vector.multi_reduction <add>, %33, %cst_22 [1, 2, 3] : vector<1x1x1x128xf32> to vector<1xf32>
      %35 = vector.shape_cast %34 : vector<1xf32> to vector<1x1x1x1xf32>
      %36 = vector.extract %35[0, 0, 0, 0] : f32 from vector<1x1x1x1xf32>
      %37 = vector.broadcast %36 : f32 to vector<1x1x1x1xf32>
      %c0_23 = arith.constant 0 : index
      %c0_24 = arith.constant 0 : index
      %c0_25 = arith.constant 0 : index
      %c0_26 = arith.constant 0 : index
      %38 = vector.load %arg5[%c0_23, %c0_24, %c0_25, %c0_26] : memref<1x1x1x1xf32, #tpu.memory_space<vmem>>, vector<1x1x1x1xf32>
      tpu.vector_store %arg5[%c0_23, %c0_24, %c0_25, %c0_26], %37 {strides = array<i32>} : memref<1x1x1x1xf32, #tpu.memory_space<vmem>>, vector<1x1x1x1xf32>,
    } else {
    }
    return
  }
  func.func @transform_0(%arg0: i32, %arg1: i32, %arg2: i32) -> (i32, i32, i32) {
    %c1_i32 = arith.constant 1 : i32
    %0 = arith.muli %arg0, %c1_i32 : i32
    %1 = arith.addi %0, %arg2 : i32
    %c0_i32 = arith.constant 0 : i32
    %c0_i32_0 = arith.constant 0 : i32
    return %arg1, %c0_i32, %1 : i32, i32, i32
  }
  func.func @transform_1(%arg0: i32, %arg1: i32, %arg2: i32) -> (i32, i32, i32) {
    %c1_i32 = arith.constant 1 : i32
    %0 = arith.muli %arg0, %c1_i32 : i32
    %1 = arith.addi %0, %arg2 : i32
    %c0_i32 = arith.constant 0 : i32
    %c0_i32_0 = arith.constant 0 : i32
    return %arg1, %c0_i32, %1 : i32, i32, i32
  }
  func.func @transform_2(%arg0: i32, %arg1: i32, %arg2: i32) -> (i32, i32, i32, i32) {
    %c0_i32 = arith.constant 0 : i32
    %c0_i32_0 = arith.constant 0 : i32
    %c0_i32_1 = arith.constant 0 : i32
    return %arg0, %arg1, %c0_i32, %c0_i32_0 : i32, i32, i32, i32
  }
}

</mosaic_0001>

<bundles_post_ra>
// kernel: tpu_custom_call.1
= control target key start
LH: loop header
LB: loop body
LE: loop exit
PB: predicated region body
PF: predicated region fallthrough
CT: control target
= control target key end

     0   :  { %7 = vsyncpa [#allocation4], 0  ;;  %s805_s0 = inlined_call_operand.hbm [shape: f32[2,4,256], index: 0, kind: input, shape index: {}]   ;;  %s806_s1 = inlined_call_operand.hbm [shape: s32[2,1,256], index: 1, kind: input, shape index: {}]   ;;  %s807_s2 = inlined_call_operand.vmem [shape: f32[2,2,1,1], index: 2, kind: output, shape index: {}]  }
   0x1   :  { %9 = vsyncpa [#allocation4 + $0x1], 0 }
   0x2   :  { %10 = vsyncpa [#allocation6], 0 }
   0x3   :  { %12 = vsyncpa [#allocation6 + $0x1], 0  ;;  %s662_s9 = smov 0   ;;  %s664_s10 = smov 0  }
   0x4   :  { %s666_s11 = smov 0   ;;  %s668_s12 = smov 0  }
   0x5   :  { %s670_s13 = smov 0   ;;  %s672_s14 = smov 0  }
   0x6   :  { %s674_s15 = smov 0   ;;  %s676_s16 = smov 0  }
   0x7 LB: > { %s417_s17 = sadd.s32 4294967295, %s644_s16   ;;  %s33_s18 = sadd.s32 1, %s636_s14  ;;  %s644_s16 = sphi %s676_s16, %s18_s16   ;;  %s640_s15 = sphi %s674_s15, %s817_s15   ;;  %s636_s14 = sphi %s672_s14, %s816_s14   ;;  %s632_s13 = sphi %s670_s13, %s815_s13   ;;  %s628_s12 = sphi %s668_s12, %s814_s12   ;;  %s624_s11 = sphi %s666_s11, %s813_s11   ;;  %s620_s10 = sphi %s664_s10, %s812_s10   ;;  %s616_s9 = sphi %s662_s9, %s811_s9  }
   0x8   : > { %p35_p0 = scmp.ge.s32.totalorder %s33_s18, 2  ;;  %s37_s19 = sadd.s32 1, %s640_s15 }
   0x9   : > { %s48_s20 = sadd.s32 1, %s624_s11  ;;  %p55_p1 = scmp.ne.s32.totalorder %s624_s11, %s620_s10 }
   0xa   : > { %s819_s18 = smov (%p35_p0, %s33_s18), 0  ;;  %s821_s19 = smov (!%p35_p0, %s37_s19), %s640_s15 }
   0xb   : > { %s43_s21 = ssub.s32 %s636_s14, %s819_s18  ;;  %p56_p2 = scmp.eq.s32.totalorder %s644_s16, 0 }
   0xc   : > { %p39_p3 = scmp.ge.s32.totalorder %s821_s19, 2  ;;  %p61_p4 = scmp.ne.s32.totalorder %s620_s10, %s616_s9 }
   0xd   : > { %p713_p5 = por %p56_p2, %p55_p1  ;;  %p62_p6 = scmp.eq.s32.totalorder %s417_s17, 0 }
   0xe   : > { %s823_s19 = smov (%p39_p3, %s821_s19), 0  ;;  %p443_p8 = scmp.lt.s32.totalorder %s644_s16, 4 }
   0xf   : > { %p719_p7 = por %p62_p6, %p61_p4  ;;  %s44_s24 = ssub.s32 %s640_s15, %s823_s19 }
  0x10   : > { %s45_s25 = sor.u32 %s44_s24, %s43_s21  ;;  %s143_s26 = sand.u32 1, %s624_s11  }
  0x11   : > { %p46_p9 = scmp.eq.s32.totalorder %s45_s25, 0  ;;  %s421_s27 = sshll.u32 %s143_s26, 2 }
  0x12   : > { %s422_s28 = sshll.u32 %s636_s14, 1  ;;  %s147_s4 = scalar_lea.vmem [#allocation3], %s421_s27 }
  0x13   : > { %s729_s29 = scalar_select %p46_p9, %s624_s11, %s48_s20  }
  0x14   : > { %s152_s30 = sadd.s32 %s640_s15, %s422_s28  ;;  %s158_s5 = sshll.u32 %s147_s4, 4  ;;  %s159_s5 = int_to_ptr.vmem [resolvable:$true] %s158_s5 }
  0x15   : > { %s423_s3 = sshll.u32 %s152_s30, 2  ;;  %p739_p10 = pnand %p443_p8, %p713_p5 }
  0x16   : > { %s154_s8 = scalar_lea.hbm %s805_s0, %s423_s3  ;;  %p425_p11 = scmp.ge.s32.totalorder %s644_s16, 1 }
  0x17   : > { %s156_s9 = sshll.u32 %s154_s8, 4  ;;  %p183_p12 = scmp.lt.s32.totalorder %s644_s16, 5  ;;  %s157_s9 = int_to_ptr.hbm [resolvable:$true] %s156_s9 }
  0x18   : > { %s144_s20 = scalar_lea.sflag [#allocation4], %s143_s26  ;;  %s174_s25 = scalar_lea.hbm %s806_s1, %s152_s30 }
  0x19   : > { %439 = dma.hbm_to_vmem [thread:$0]  (!%p739_p10), %s157_s9, 64, %s159_s5, %s144_s20  }
  0x1a   : > { %p184_p13 = pnand %p425_p11, %p183_p12  ;;  %s176_s27 = sshll.u32 %s174_s25, 4  ;;  %s177_s27 = int_to_ptr.hbm [resolvable:$true] %s176_s27 }
  0x1b   : > { %s168_s22 = scalar_lea.vmem [#allocation5], %s143_s26  ;;  %s166_s3 = scalar_lea.sflag [#allocation6], %s143_s26 }
  0x1c   : > { %s178_s28 = sshll.u32 %s168_s22, 4  ;;  %187 = sbr.rel (%p184_p13) target bundleno = 279 (0x117), region = 28  ;;  %s179_s28 = int_to_ptr.vmem [resolvable:$true] %s178_s28 }
  0x1d   : > { %442 = dma.hbm_to_vmem [thread:$0]  (!%p739_p10), %s177_s27, 16, %s179_s28, %s166_s3  }
  0x1e   : > { %s753_s4 = sand.u32 (!%p184_p13), 1, %s620_s10  }
  0x1f   : > { %s426_s5 = sshll.u32 (!%p184_p13), %s753_s4, 2  ;;  %s190_s6 = scalar_lea.sflag (!%p184_p13), [#allocation4], %s753_s4 }
  0x20   : > { %s193_s7 = scalar_lea.vmem (!%p184_p13), [#allocation3], %s426_s5 }
  0x21   : > { %607 = dma.done.wait (%p719_p7), %s190_s6, 64  }
  0x22   : > { %609 = vsyncadd (%p719_p7), %s190_s6, 4294967232  ;;  %s200_s26 = scalar_lea.sflag [#allocation6], %s753_s4  ;;  %s202_s30 = scalar_lea.vmem [#allocation5], %s753_s4 }
  0x23   : > { %611 = dma.done.wait (%p719_p7), %s200_s26, 16  }
  0x24   : > { %613 = vsyncadd (%p719_p7), %s200_s26, 4294967280  ;;  %v646_v0 = vmov 0.0   ;;  %vm246_vm0 = vcmask 1043456   ;;  %v244_v1 = vld [vmem:[%s193_s7] sm:$0xf]  ;;  %v267_v7 = vlaneseq  ;;  %vm289_vm3 = vcmask 1040384  }
  0x25   : > { %243 = vst [vmem:[#allocation2] sm:$0x1] %v646_v0  ;;  %v247_v2 = vsel %vm246_vm0, %v244_v1, -inf  ;;  %v509_v11 = vld [vmem:[%s202_s30] ss:$0 sm:$0xff]  ;;  %p232_p0 = scmp.lt.s32.totalorder %s632_s13, 1 }
  0x26   : > { %v248_v3 = vrot.slane %v247_v2, 4  ;;  %v268_v10 = vshrl.u32 %v267_v7, 7  ;;  %v245_v30 = vld [vmem:[%s202_s30] sm:$0x1]  ;;  %p234_p1 = scmp.lt.s32.totalorder %s628_s12, 1  ;;  %vm301_vm4 = vcmask 0  }
  0x27   : > { %vm279_vm2 = vcmp.ge.s32.totalorder %v245_v30, 0  ;;  %s825_s13 = smov (!%p232_p0, %s632_s13), 1 }
  0x28   : > { %v249_v4 = vmax.f32 %v247_v2, %v248_v3  ;;  %vm270_vm1 = vcmp.eq.s32.totalorder %v268_v10, %v509_v11  ;;  %s827_s12 = smov (!%p234_p1, %s628_s12), 1  ;;  %s427_s23 = sshll.u32 %s825_s13, 1 }
  0x29   : > { %v271_v14 = vsel %vm270_vm1, %v244_v1, 0.0  ;;  %s237_s8 = sadd.s32 %s427_s23, %s827_s12 }
  0x2a   : > { %v250_v5 = vrot.slane %v249_v4, 2  ;;  %v272_v15 = vsel %vm246_vm0, %v271_v14, 0.0  ;;  %s238_s20 = scalar_lea.vmem %s807_s2, %s237_s8 }
  0x2b   : > { %v273_v18 = vrot.slane %v272_v15, 4 }
  0x2c   : > { %v251_v6 = vmax.f32 %v249_v4, %v250_v5  ;;  %v282_v35 = vld [vmem:[#allocation2] sm:$0x1] }
  0x2d   : > { %v274_v21 = vadd.f32 %v273_v18, %v272_v15 }
  0x2e   : > { %v252_v8 = vrot.slane %v251_v6, 1 }
  0x2f   : > { %v275_v24 = vrot.slane %v274_v21, 2 }
  0x30   : > { %v253_v9 = vmax.f32 %v251_v6, %v252_v8 }
  0x31   : > { %v276_v27 = vadd.f32 %v275_v24, %v274_v21 }
  0x32   : > { %v254_v12 = vsub.f32 %v244_v1, %v253_v9 }
  0x33   : > { %v277_v28 = vrot.slane %v276_v27, 1 }
  0x34   : > { %v255_v13 = vmul.f32 1.442695, %v254_v12 }
  0x35   : > { %v278_v32 = vadd.f32 %v277_v28, %v276_v27 }
  0x36   : > { %510 = vpow2.f32 %v255_v13 }
  0x3c   : > { %v511_v16 = vpop.eup %510 }
  0x3d   : > { %v257_v17 = vsel %vm246_vm0, %v511_v16, 0.0 }
  0x3e   : > { %v258_v19 = vrot.slane %v257_v17, 4 }
  0x40   : > { %v259_v20 = vadd.f32 %v258_v19, %v257_v17 }
  0x42   : > { %v260_v22 = vrot.slane %v259_v20, 2 }
  0x44   : > { %v261_v23 = vadd.f32 %v260_v22, %v259_v20 }
  0x46   : > { %v262_v25 = vrot.slane %v261_v23, 1 }
  0x48   : > { %v263_v26 = vadd.f32 %v262_v25, %v261_v23 }
  0x4a   : > { %512 = vlog2.f32 %v263_v26 }
  0x50   : > { %v513_v29 = vpop.eup %512 }
  0x51   : > { %v265_v31 = vmul.f32 0.6931472, %v513_v29 }
  0x53   : > { %v266_v33 = vadd.f32 %v265_v31, %v253_v9 }
  0x55   : > { %v280_v34 = vsub.f32 %v266_v33, %v278_v32 }
  0x57   : > { %v281_v36 = vsel %vm279_vm2, %v280_v34, 0.0 }
  0x58   : > { %v283_v37 = vadd.f32 %v282_v35, %v281_v36 }
  0x5a   : > { %284 = vst [vmem:[#allocation2] sm:$0x1] %v283_v37 }
  0x61   : > { %v288_v38 = vld [vmem:[#allocation2] sm:$0x1] }
  0x62   : > { %v290_v39 = vsel %vm289_vm3, %v288_v38, 0.0 }
  0x63   : > { %291 = vadd.xlane.f32.xlu0 %v290_v39 }
  0xd6   : > { %v292_v40 = vpop.xlane.xlu0 %291 }
  0xd7   : > { %v293_v41 = vrot.slane %v292_v40, 4 }
  0xd9   : > { %v294_v42 = vadd.f32 %v293_v41, %v292_v40 }
  0xdb   : > { %v295_v43 = vrot.slane %v294_v42, 2 }
  0xdd   : > { %v296_v44 = vadd.f32 %v295_v43, %v294_v42 }
  0xdf   : > { %v297_v45 = vrot.slane %v296_v44, 1 }
  0xe1   : > { %v298_v46 = vadd.f32 %v297_v45, %v296_v44 }
  0xe3   : > { %430 = vpush %v298_v46 }
 0x114   : > { %s431_s21 = spop %430 }
 0x115   : > { %v300_v47 = vstv %s431_s21 }
 0x116   : > { %302 = vst.msk [vmem:[%s238_s20] sm:$0x1] %vm301_vm4, %v300_v47 }
 0x117 PF: > { %s18_s16 = sadd.s32 1, %s644_s16   ;;  %s811_s9 = smov %s620_s10 }
 0x118   : > { %p15_p2 = scmp.ge.s32.totalorder %s18_s16, 6   ;;  %s812_s10 = smov %s624_s11 }
 0x119   : > { %s813_s11 = smov %s729_s29  ;;  %s814_s12 = smov %s636_s14 }
 0x11a   : > { %s815_s13 = smov %s640_s15  ;;  %s816_s14 = smov %s819_s18 }
 0x11b   : > { %s817_s15 = smov %s823_s19  ;;  %17 = sbr.rel (!%p15_p2) target bundleno = 7 (0x7), region = 89 }
 0x120   :  { %328 = vsyncpa [#allocation4], 1 }
 0x121   :  { %330 = vsyncpa [#allocation4 + $0x1], 1 }
 0x122   :  { %331 = vsyncpa [#allocation6], 1 }
 0x123   :  { %333 = vsyncpa [#allocation6 + $0x1], 1 }

</bundles_post_ra>
